<compile_context>
chip_gen: v6e
topology: v6e:2x2x1
jax: 0.10.0
libtpu: 0.0.40
codegen_flags: <defaults>
</compile_context>

<pallas_src>
import functools
import numpy as np

import jax
import jax.numpy as jnp
from jax.experimental import pallas as pl
from jax.experimental.pallas import tpu as pltpu


def _round_up(x, m):
    return ((x + m - 1) // m) * m


# Packed side-input column layout (f32).
_COL_TGT, _COL_OFF, _COL_PT, _COL_WSUM, _COL_CONST = 0, 1, 2, 3, 4
_SIDE_K = 8


def _casls_kl_kernel(n_rows, cls_ref, side_ref, x_ref, out_ref):
    """Per-tile partial sum of row-wise KL(weight || softmax(x)).

    PyTorch KLDivLoss('none') convention, summed over the class dim per row:
        kl_row = sum_c xlogy(w_c, w_c) - w_c * log_softmax(x)_c
               = const_row - sum_c w_c * shifted_c + lse * wsum
    with  w_c = off (c != target) / pt (c == target),
          shifted = x - max(x),  lse = log(sum(exp(shifted))),
          const_row = (C-1)*xlogy(off) + xlogy(pt),  wsum = (C-1)*off + pt
    (const_row / wsum precomputed host-side in float64).

    Rows with off == pt == 0 (ignore_index / padding) contribute exactly 0;
    ragged-tail rows (>= n_rows, garbage logits) are masked explicitly.
    """
    tile_n = x_ref.shape[0]
    x = x_ref[...].astype(jnp.float32)            # (T, C) logits, upcast in-register
    side = side_ref[...]                          # (T, 8) packed per-row scalars
    cls = cls_ref[...]                            # (1, C) class-index row (resident)

    tgt = side[:, _COL_TGT:_COL_TGT + 1]          # (T, 1)
    off = side[:, _COL_OFF:_COL_OFF + 1]
    pt = side[:, _COL_PT:_COL_PT + 1]
    wsum = side[:, _COL_WSUM:_COL_WSUM + 1]
    const_row = side[:, _COL_CONST:_COL_CONST + 1]

    # Numerically-stable log-softmax pieces.
    row_max = jnp.max(x, axis=1, keepdims=True)
    shifted = x - row_max
    lse = jnp.log(jnp.sum(jnp.exp(shifted), axis=1, keepdims=True))

    # Single fused weighted reduction over the class dim.
    w = jnp.where(cls == tgt, pt, off)            # (T, C) via broadcast
    sum_w_shifted = jnp.sum(w * shifted, axis=1, keepdims=True)

    kl_row = const_row - sum_w_shifted + lse * wsum   # (T, 1)

    # Mask the ragged tail block (logit rows >= n_rows are out-of-bounds garbage).
    base = pl.program_id(0) * tile_n
    row_id = base + jax.lax.broadcasted_iota(jnp.int32, (tile_n, 1), 0)
    partial = jnp.sum(jnp.where(row_id < n_rows, kl_row, 0.0))

    # Lane-dense (1, 8, 128) store of the per-tile partial sum (wrapper reads [i, 0, 0]).
    out_ref[...] = jnp.broadcast_to(partial, out_ref.shape)


def _prepare_row_params(targets_np, labels, matric_np, alpha, ignore_index, nclass, n_pad):
    """Host-side mirror of the data-dependent prologue of the PyTorch forward.

    Collapses ignore_index filtering, EOS segmentation, the `matric` fancy gather
    and the per-`labels` length smoothing into packed per-row scalars.
    """
    # TODO(synk): this prologue has dynamic shapes and consumes Python lists, so it
    # stays host-side; for a training loop it should be precomputed off the
    # step's critical path (it forces a device->host read of `targets`).
    t_all = np.asarray(targets_np).reshape(-1).astype(np.int64)
    n_rows = t_all.shape[0]
    keep = np.nonzero(t_all != ignore_index)[0] if ignore_index >= 0 else np.arange(n_rows)
    t_f = t_all[keep]
    m_tok = t_f.shape[0]

    matric = np.asarray(matric_np, dtype=np.float64)
    chunks = []
    i = 0
    for j in np.nonzero(t_f == 1)[0]:             # segments end at EOS (target == 1)
        forth = np.full(j + 1 - i, m_tok - 1, dtype=np.int64)   # mirrors targets.shape[-1]-1
        forth[1:] = t_f[i:j]
        chunks.append(matric[forth, t_f[i:j + 1]])
        i = j + 1
    need_smoothed = np.concatenate(chunks, 0)

    length = np.array([len(l) for l in labels], dtype=np.int64) + 1
    smoothing_seq = 1.0 - np.power(1.0 - alpha, 1.0 / length)
    smoothing = np.repeat(smoothing_seq, length) * need_smoothed    # (m_tok,)

    off_f = smoothing / (nclass - 1)              # off-class weight
    pt_f = 1.0 - nclass * off_f                   # target-class weight after scatter

    # xlogy(w, w) with the PyTorch convention xlogy(0, 0) == 0 (float64 host-side).
    xlogy_off = np.where(off_f > 0, off_f * np.log(np.where(off_f > 0, off_f, 1.0)), 0.0)
    xlogy_pt = np.where(pt_f > 0, pt_f * np.log(np.where(pt_f > 0, pt_f, 1.0)), 0.0)

    # Packed per-row scalars; ignored / padded rows stay all-zero -> kl_row == 0.
    side = np.zeros((n_pad, _SIDE_K), dtype=np.float32)
    side[keep, _COL_TGT] = t_f.astype(np.float32)     # exact for nclass < 2**24
    side[keep, _COL_OFF] = off_f
    side[keep, _COL_PT] = pt_f
    side[keep, _COL_WSUM] = (nclass - 1) * off_f + pt_f
    side[keep, _COL_CONST] = (nclass - 1) * xlogy_off + xlogy_pt
    norm = float(length.sum())
    return side, norm


def casls_chinese_attn_loss(inputs, targets, labels, matric, *,
                            alpha=0.0, ignore_index=-1, tile_n=1024):
    """JAX/Pallas forward of CaslsChineseAttnLoss (scalar loss)."""
    nclass = inputs.shape[-1]
    x = inputs.reshape(-1, nclass)                # no copy; logits stream in native dtype
    n_rows = x.shape[0]
    itemsize = x.dtype.itemsize

    # Sublane packing: f32 -> multiples of 8 rows, bf16 -> 16, int8/fp8 -> 32.
    sub_mult = max(8, 8 * (4 // max(itemsize, 1)))
    # Real per-row working set: double-buffered logits tile + ~3 full-width f32
    # temporaries (shifted / exp / w) + packed side stream + slack.
    per_row_bytes = nclass * (2 * itemsize + 12) + 2 * _SIDE_K * 4 + 64
    budget = 20 * 1024 * 1024                     # keeps the step under 32 MiB scoped VMEM (v7x-safe)
    max_rows = max(sub_mult, budget // per_row_bytes)
    tile_n = int(min(tile_n, max_rows, _round_up(n_rows, sub_mult)))
    tile_n = max(sub_mult, (tile_n // sub_mult) * sub_mult)

    grid = pl.cdiv(n_rows, tile_n)                # ragged tail handled in-kernel (no logits pad)
    n_pad = grid * tile_n                         # only the tiny side array is padded

    side_np, norm = _prepare_row_params(
        np.asarray(targets), labels, np.asarray(matric), alpha, ignore_index, nclass, n_pad)
    side = jnp.asarray(side_np)
    cls_row = jnp.asarray(np.arange(nclass, dtype=np.float32).reshape(1, nclass))

    cost = pl.CostEstimate(
        flops=8 * n_rows * nclass,
        transcendentals=n_rows * nclass,
        bytes_accessed=int(n_rows * nclass * itemsize
                           + n_pad * _SIDE_K * 4 + grid * 8 * 128 * 4),
    )

    partials = pl.pallas_call(
        functools.partial(_casls_kl_kernel, n_rows),
        out_shape=jax.ShapeDtypeStruct((grid, 8, 128), jnp.float32),
        grid=(grid,),
        in_specs=[
            pl.BlockSpec((1, nclass), lambda i: (0, 0)),         # class-index row (resident)
            pl.BlockSpec((tile_n, _SIDE_K), lambda i: (i, 0)),   # packed per-row scalars
            pl.BlockSpec((tile_n, nclass), lambda i: (i, 0)),    # logits (streamed)
        ],
        out_specs=pl.BlockSpec((1, 8, 128), lambda i: (i, 0, 0)),  # per-tile partial sum
        compiler_params=pltpu.CompilerParams(
            dimension_semantics=("parallel",),    # no carried state -> megacore shardable (v7x)
            vmem_limit_bytes=32 * 1024 * 1024,
        ),
        cost_estimate=cost,
    )(cls_row, side, x)

    # Single deferred normalization:  kl.sum() / length.sum()
    return jnp.sum(partials[:, 0, 0]) / jnp.float32(norm)


def _reference_loss(inputs, targets, labels, matric, alpha, ignore_index):
    """Pure-numpy (float64) mirror of the PyTorch module for the sanity check."""
    x = np.asarray(inputs, dtype=np.float64)
    nclass = x.shape[-1]
    x = x.reshape(-1, nclass)
    t = np.asarray(targets).reshape(-1).astype(np.int64)
    if ignore_index >= 0:
        idx = np.nonzero(t != ignore_index)[0]
        x = x[idx, :]
        t = t[idx]
    matric = np.asarray(matric, dtype=np.float64)

    chunks = []
    i = 0
    for j in np.nonzero(t == 1)[0]:
        forth = np.full(j + 1 - i, t.shape[-1] - 1, dtype=np.int64)
        forth[1:] = t[i:j]
        chunks.append(matric[forth, t[i:j + 1]])
        i = j + 1
    need_smoothed = np.concatenate(chunks, 0)

    length = np.array([len(l) for l in labels], dtype=np.int64) + 1
    smoothing_seq = 1.0 - np.power(1.0 - alpha, 1.0 / length)
    smoothing = np.repeat(smoothing_seq, length) * need_smoothed

    weight = np.ones_like(x) * (smoothing / (nclass - 1))[:, None]
    src = 1.0 - weight.sum(axis=1)
    weight[np.arange(weight.shape[0]), t] = src

    shifted = x - x.max(axis=1, keepdims=True)
    logp = shifted - np.log(np.exp(shifted).sum(axis=1, keepdims=True))
    xlogy = np.where(weight > 0, weight * np.log(np.where(weight > 0, weight, 1.0)), 0.0)
    kl = xlogy - weight * logp
    return kl.sum() / length.sum()


if __name__ == "__main__":
    key = jax.random.PRNGKey(0)
    k_logits, k_matric = jax.random.split(key)

    # seq=9 -> 18 rows; with tile_n=8 the grid is 3 with a ragged tail block,
    # exercising both the tiled path and the in-kernel tail masking.
    batch, seq, nclass = 2, 9, 32
    alpha, ignore_index = 0.1, 0

    inputs = jax.random.normal(k_logits, (batch, seq, nclass), dtype=jnp.float32) * 3.0
    matric = jax.random.uniform(k_matric, (nclass, nclass), dtype=jnp.float32)

    # labels: only their lengths matter; targets = label tokens + EOS(=1) + pad(=0).
    labels = [[3, 4, 5, 6, 7], [8, 9, 10]]
    targets_np = np.full((batch, seq), ignore_index, dtype=np.int32)
    targets_np[0, :5] = [3, 4, 5, 6, 7]
    targets_np[0, 5] = 1
    targets_np[1, :3] = [8, 9, 10]
    targets_np[1, 3] = 1
    targets = jnp.asarray(targets_np)

    loss = casls_chinese_attn_loss(inputs, targets, labels, matric,
                                   alpha=alpha, ignore_index=ignore_index, tile_n=8)
    loss = jax.block_until_ready(loss)

    ref = _reference_loss(np.asarray(inputs), targets_np, labels, np.asarray(matric),
                          alpha, ignore_index)
    assert np.allclose(np.asarray(loss), ref, rtol=1e-4, atol=1e-5), (float(loss), ref)

    print("KERNEL_OK")
</pallas_src>

<mosaic_0001>
module attributes {stable_mosaic.version = 11 : i64} {
  func.func @_casls_kl_kernel(%arg0: i32, %arg1: memref<1x32xf32, #tpu.memory_space<vmem>>, %arg2: memref<8x8xf32, #tpu.memory_space<vmem>>, %arg3: memref<8x32xf32, #tpu.memory_space<vmem>>, %arg4: memref<1x8x128xf32, #tpu.memory_space<vmem>>) attributes {dimension_semantics = [#tpu.dimension_semantics<parallel>], iteration_bounds = array<i64: 3>, scalar_prefetch = 0 : i64, scratch_operands = 0 : i64, tpu.core_type = #tpu.core_type<tc>, window_params = [{pipeline_mode = #tpu.pipeline_mode<synchronous>, transform_indices = @transform_0, window_bounds = array<i64: 1, 32>}, {transform_indices = @transform_1, window_bounds = array<i64: 8, 8>}, {transform_indices = @transform_2, window_bounds = array<i64: 8, 32>}, {transform_indices = @transform_3, window_bounds = array<i64: 1, 8, 128>}]} {
    %c0 = arith.constant 0 : index
    %c0_0 = arith.constant 0 : index
    %0 = vector.load %arg3[%c0, %c0_0] : memref<8x32xf32, #tpu.memory_space<vmem>>, vector<8x32xf32>
    %c0_1 = arith.constant 0 : index
    %c0_2 = arith.constant 0 : index
    %1 = vector.load %arg2[%c0_1, %c0_2] : memref<8x8xf32, #tpu.memory_space<vmem>>, vector<8x8xf32>
    %c0_3 = arith.constant 0 : index
    %c0_4 = arith.constant 0 : index
    %2 = vector.load %arg1[%c0_3, %c0_4] : memref<1x32xf32, #tpu.memory_space<vmem>>, vector<1x32xf32>
    %3 = vector.extract_strided_slice %1 {offsets = [0, 0], sizes = [8, 1], strides = [1, 1]} : vector<8x8xf32> to vector<8x1xf32>
    %4 = vector.extract_strided_slice %1 {offsets = [0, 1], sizes = [8, 1], strides = [1, 1]} : vector<8x8xf32> to vector<8x1xf32>
    %5 = vector.extract_strided_slice %1 {offsets = [0, 2], sizes = [8, 1], strides = [1, 1]} : vector<8x8xf32> to vector<8x1xf32>
    %6 = vector.extract_strided_slice %1 {offsets = [0, 3], sizes = [8, 1], strides = [1, 1]} : vector<8x8xf32> to vector<8x1xf32>
    %7 = vector.extract_strided_slice %1 {offsets = [0, 4], sizes = [8, 1], strides = [1, 1]} : vector<8x8xf32> to vector<8x1xf32>
    %cst = arith.constant dense<0xFF800000> : vector<8xf32>
    %8 = vector.multi_reduction <maximumf>, %0, %cst [1] : vector<8x32xf32> to vector<8xf32>
    %9 = vector.shape_cast %8 : vector<8xf32> to vector<8x1xf32>
    %10 = vector.broadcast %9 : vector<8x1xf32> to vector<8x32xf32>
    %11 = arith.subf %0, %10 : vector<8x32xf32>
    %12 = math.exp %11 : vector<8x32xf32>
    %cst_5 = arith.constant dense<0.000000e+00> : vector<8xf32>
    %13 = vector.multi_reduction <add>, %12, %cst_5 [1] : vector<8x32xf32> to vector<8xf32>
    %14 = vector.shape_cast %13 : vector<8xf32> to vector<8x1xf32>
    %15 = math.log %14 : vector<8x1xf32>
    %16 = vector.broadcast %2 : vector<1x32xf32> to vector<8x32xf32>
    %17 = vector.broadcast %3 : vector<8x1xf32> to vector<8x32xf32>
    %18 = arith.cmpf oeq, %16, %17 : vector<8x32xf32>
    %19 = vector.shape_cast %5 : vector<8x1xf32> to vector<8x1xf32>
    %20 = vector.broadcast %19 : vector<8x1xf32> to vector<8x32xf32>
    %21 = vector.shape_cast %4 : vector<8x1xf32> to vector<8x1xf32>
    %22 = vector.broadcast %21 : vector<8x1xf32> to vector<8x32xf32>
    %23 = arith.select %18, %20, %22 : vector<8x32xi1>, vector<8x32xf32>
    %24 = arith.mulf %23, %11 : vector<8x32xf32>
    %cst_6 = arith.constant dense<0.000000e+00> : vector<8xf32>
    %25 = vector.multi_reduction <add>, %24, %cst_6 [1] : vector<8x32xf32> to vector<8xf32>
    %26 = vector.shape_cast %25 : vector<8xf32> to vector<8x1xf32>
    %27 = arith.subf %7, %26 : vector<8x1xf32>
    %28 = arith.mulf %15, %6 : vector<8x1xf32>
    %29 = arith.addf %27, %28 : vector<8x1xf32>
    %c8_i32 = arith.constant 8 : i32
    %30 = arith.muli %arg0, %c8_i32 : i32
    %31 = tpu.iota {dimensions = array<i32: 0>} : vector<8x1xi32>
    %32 = vector.broadcast %30 : i32 to vector<8x1xi32>
    %33 = arith.addi %32, %31 : vector<8x1xi32>
    %c18_i32 = arith.constant 18 : i32
    %34 = vector.broadcast %c18_i32 : i32 to vector<8x1xi32>
    %35 = arith.cmpi slt, %33, %34 : vector<8x1xi32>
    %cst_7 = arith.constant 0.000000e+00 : f32
    %36 = vector.broadcast %cst_7 : f32 to vector<8x1xf32>
    %37 = arith.select %35, %29, %36 : vector<8x1xi1>, vector<8x1xf32>
    %38 = vector.shape_cast %37 : vector<8x1xf32> to vector<1x8x1xf32>
    %cst_8 = arith.constant dense<0.000000e+00> : vector<1xf32>
    %39 = vector.multi_reduction <add>, %38, %cst_8 [1, 2] : vector<1x8x1xf32> to vector<1xf32>
    %40 = vector.shape_cast %39 : vector<1xf32> to vector<1x1x1xf32>
    %41 = vector.extract %40[0, 0, 0] : f32 from vector<1x1x1xf32>
    %42 = vector.broadcast %41 : f32 to vector<1x8x128xf32>
    %c0_9 = arith.constant 0 : index
    %c0_10 = arith.constant 0 : index
    %c0_11 = arith.constant 0 : index
    %43 = vector.load %arg4[%c0_9, %c0_10, %c0_11] : memref<1x8x128xf32, #tpu.memory_space<vmem>>, vector<1x8x128xf32>
    tpu.vector_store %arg4[%c0_9, %c0_10, %c0_11], %42 {strides = array<i32>} : memref<1x8x128xf32, #tpu.memory_space<vmem>>, vector<1x8x128xf32>,
    return
  }
  func.func @transform_0(%arg0: i32) -> (i32, i32) {
    %c0_i32 = arith.constant 0 : i32
    %c0_i32_0 = arith.constant 0 : i32
    %c0_i32_1 = arith.constant 0 : i32
    return %c0_i32, %c0_i32_0 : i32, i32
  }
  func.func @transform_1(%arg0: i32) -> (i32, i32) {
    %c0_i32 = arith.constant 0 : i32
    %c0_i32_0 = arith.constant 0 : i32
    return %arg0, %c0_i32 : i32, i32
  }
  func.func @transform_2(%arg0: i32) -> (i32, i32) {
    %c0_i32 = arith.constant 0 : i32
    %c0_i32_0 = arith.constant 0 : i32
    return %arg0, %c0_i32 : i32, i32
  }
  func.func @transform_3(%arg0: i32) -> (i32, i32, i32) {
    %c0_i32 = arith.constant 0 : i32
    %c0_i32_0 = arith.constant 0 : i32
    %c0_i32_1 = arith.constant 0 : i32
    return %arg0, %c0_i32, %c0_i32_0 : i32, i32, i32
  }
}

</mosaic_0001>

<bundles_post_ra>
// kernel: tpu_custom_call.1
= control target key start
LH: loop header
LB: loop body
LE: loop exit
PB: predicated region body
PF: predicated region fallthrough
CT: control target
= control target key end

     0   :  { %8 = vsyncpa [#allocation3], 0  ;;  %s596_s0 = inlined_call_operand.vmem [shape: f32[1,32], index: 0, kind: input, shape index: {}]   ;;  %s597_s1 = inlined_call_operand.vmem [shape: f32[24,8], index: 1, kind: input, shape index: {}]   ;;  %s598_s2 = inlined_call_operand.vmem [shape: f32[18,32], index: 2, kind: input, shape index: {}]   ;;  %s599_s3 = inlined_call_operand.hbm [shape: f32[3,8,128], index: 3, kind: output, shape index: {}]  }
   0x1   :  { %10 = vsyncpa [#allocation3 + $0x1], 0  ;;  %s493_s12 = smov 0   ;;  %s495_s13 = smov 0  }
   0x2   :  { %s497_s14 = smov 0   ;;  %s499_s15 = smov 0  }
   0x3 LB: > { %s514_s16 = sadd.s32 4294967295, %s465_s15   ;;  %s339_s17 = sadd.s32 4294967294, %s465_s15   ;;  %s465_s15 = sphi %s499_s15, %s605_s15   ;;  %s461_s14 = sphi %s497_s14, %s604_s14   ;;  %s457_s13 = sphi %s495_s13, %s603_s13   ;;  %s453_s12 = sphi %s493_s12, %s602_s12  }
   0x4   : > { %s518_s18 = sadd.s32 1, %s465_s15   ;;  %s96_s19 = sadd.s32 1, %s461_s14 }
   0x5   : > { %s93_s20 = ssub.s32 %s465_s15, %s518_s18  ;;  %p106_p0 = scmp.ne.s32.totalorder %s461_s14, %s457_s13 }
   0x6   : > { %p94_p1 = scmp.eq.s32.totalorder %s93_s20, 0  ;;  %p107_p2 = scmp.eq.s32.totalorder %s514_s16, 2 }
   0x7   : > { %p112_p3 = scmp.ne.s32.totalorder %s457_s13, %s453_s12  ;;  %p113_p4 = scmp.eq.s32.totalorder %s339_s17, 2 }
   0x8   : > { %s529_s21 = scalar_select %p94_p1, %s461_s14, %s96_s19  }
   0x9   : > { %p531_p5 = por %p107_p2, %p106_p0  ;;  %p535_p6 = por %p113_p4, %p112_p3 }
   0xa   : > { %p342_p7 = scmp.ge.s32.totalorder %s465_s15, 1  ;;  %p148_p8 = scmp.lt.s32.totalorder %s465_s15, 4 }
   0xc   : > { %p149_p9 = pnand %p342_p7, %p148_p8 }
   0xd   : > { %p175_p10 = scmp.lt.s32.totalorder (!%p149_p9), %s514_s16, 2  ;;  %s470_s7 = smov (!%p149_p9), 1  }
   0xe   : > { %152 = sbr.rel (%p149_p9) target bundleno = 807 (0x327), region = 32  ;;  %s347_s8 = sshll.u32 (!%p149_p9), %s514_s16, 3 }
   0xf   : > { %s471_s9 = smov (!%p149_p9), 124   ;;  %s172_s10 = sand.u32 (!%p149_p9), 1, %s457_s13  }
  0x10   : > { %s343_s11 = sshll.u32 (!%p149_p9), %s172_s10, 3  ;;  %s349_s20 = sshll.u32 (!%p149_p9), %s514_s16, 7 }
  0x11   : > { %s174_s17 = scalar_lea.vmem (!%p149_p9), [#allocation2], %s343_s11  ;;  %s266_s27 = scalar_lea.hbm (!%p149_p9), %s599_s3, %s349_s20 }
  0x12   : > { %s268_s19 = sshll.u32 (!%p149_p9), %s174_s17, 4  ;;  %s472_s30 = smov (!%p149_p9), [#allocation2]   ;;  %s558_s19 = int_to_ptr.vmem [resolvable:$true] %s268_s19 }
  0x13   : > { %s176_s24 = scalar_select %p175_p10, %s514_s16, 2  ;;  %vm186_vm0 = vcmask 261120   ;;  %v467_v3 = vmov 0   ;;  %v468_v4 = vmov 1   ;;  %v469_v5 = vmov 2  }
  0x14   : > { %398 = vset.pattern.permute.xlu1 %v467_v3  ;;  %400 = vset.pattern.permute.xlu0 %v468_v4  ;;  %v346_v13 = vld [vmem:[%s596_s0] ss:$0 sm:$0xff]  ;;  %v231_v22 = vlaneseq  ;;  %v233_v24 = vstv %s347_s8  ;;  %vm241_vm3 = vcmask 7168   ;;  %s405_s29 = scalar_lea.vmem %s558_s19, 128  ;;  %s409_s16 = sshll.u32 %s472_s30, 4  ;;  %s410_s16 = int_to_ptr.vmem [resolvable:$false] %s409_s16 }
  0x15   : > { %s344_s25 = sshll.u32 %s176_s24, 3  ;;  %p406_p11 = scmp.ne.s32.totalorder %s558_s19, %s405_s29 }
  0x16   : > { %s182_s28 = scalar_lea.vmem %s598_s2, %s344_s25  ;;  %s178_s4 = scalar_lea.vmem %s597_s1, %s344_s25  ;;  %v232_v23 = vshrl.u32 %v231_v22, 7 }
  0x17   : > { %v183_v0 = vld [vmem:[%s182_s28] sm:$0xff]  ;;  %s255_s28 = scalar_lea.sflag [#allocation3], %s172_s10  ;;  %p407_p12 = pnand %p406_p11, %p531_p5 }
  0x18   : > { %v187_v1 = vsel %vm186_vm0, %v183_v0, -inf  ;;  %v184_v2 = vld [vmem:[%s178_s4] sm:$0xff]  ;;  %v234_v26 = vadd.s32 %v233_v24, %v232_v23  ;;  %s411_s4 = scalar_lea.vmem %s410_s16, 256  ;;  %p412_p0 = scmp.lt.s32.totalorder %s558_s19, %s410_s16 }
  0x19   : > { %188 = vmax.xlane.f32.xlu0 %v187_v1  ;;  %206 = vperm.xlu1 %398, %v184_v2   ;;  %p408_p13 = pneg %p407_p12  ;;  %p413_p1 = scmp.lt.s32.totalorder %s411_s4, %s405_s29 }
  0x1a   : > { %vm235_vm2 = vcmp.lt.s32.totalorder %v234_v26, 18 }
  0x1b   : > { %p414_p2 = por %p413_p1, %p412_p0 }
  0x1d   : > { %399 = vset.pattern.permute.xlu1 %v469_v5  ;;  %p415_p3 = pnand %p414_p2, %p408_p13 }
  0x1e   : > { %211 = vperm.xlu1 %399, %v184_v2  }
  0x94   : > { %v207_v11 = vpop.permute.xlu1 %206 }
  0x95   : > { %vm209_vm1 = vcmp.eq.f32.partialorder %v346_v13, %v207_v11 }
  0x99   : > { %v212_v14 = vpop.permute.xlu1 %211 }
  0xa2   : > { %v189_v6 = vpop.xlane.xlu0 %188 }
  0xa3   : > { %v190_v7 = vsub.f32 %v183_v0, %v189_v6 }
  0xa5   : > { %v191_v8 = vmul.f32 1.442695, %v190_v7 }
  0xa7   : > { %401 = vpow2.f32 %v191_v8 }
  0xb4   : > { %v402_v9 = vpop.eup %401 }
  0xb5   : > { %v193_v10 = vsel %vm186_vm0, %v402_v9, 0.0 }
  0xb6   : > { %194 = vadd.xlane.f32.xlu0 %v193_v10 }
  0xcc   : > { %215 = vperm.xlu0 %400, %v184_v2  }
 0x13f   : > { %v195_v12 = vpop.xlane.xlu0 %194 }
 0x140   : > { %403 = vlog2.f32 %v195_v12 }
 0x147   : > { %v216_v15 = vpop.permute.xlu0 %215 }
 0x148   : > { %v218_v16 = vsel %vm209_vm1, %v212_v14, %v216_v15 }
 0x149   : > { %v219_v17 = vmul.f32 %v218_v16, %v190_v7 }
 0x14b   : > { %v220_v18 = vsel %vm186_vm0, %v219_v17, 0.0 }
 0x14c   : > { %221 = vadd.xlane.f32.xlu1 %v220_v18 }
 0x14d   : > { %v404_v19 = vpop.eup %403 }
 0x14e   : > { %v197_v20 = vmul.f32 0.6931472, %v404_v19 }
 0x150   : > { %v224_v21 = vmul.f32 %v197_v20, %v184_v2 }
 0x15d   : > { %226 = vrot.lane.b32.xlu1 %v224_v21, %s470_s7 }
 0x1d5   : > { %v222_v25 = vpop.xlane.xlu1 %221 }
 0x1d6   : > { %v223_v27 = vsub.f32 %v184_v2, %v222_v25 }
 0x1d9   : > { %v227_v28 = vpop.permute.xlu1 %226 }
 0x1da   : > { %v229_v29 = vadd.f32 %v227_v28, %v223_v27 }
 0x1dc   : > { %v236_v30 = vsel %vm235_vm2, %v229_v29, 0.0 }
 0x1dd   : > { %238 = vrot.lane.b32.xlu0 %v236_v30, %s471_s9 }
 0x24f   : > { %v239_v31 = vpop.permute.xlu0 %238 }
 0x250   : > { %v242_v32 = vsel %vm241_vm3, %v239_v31, 0.0 }
 0x251   : > { %243 = vadd.xlane.f32.xlu0 %v242_v32 }
 0x2da   : > { %v244_v33 = vpop.xlane.xlu0 %243 }
 0x2db   : > { %v245_v34 = vrot.slane %v244_v33, 4 }
 0x2dd   : > { %v246_v35 = vadd.f32 %v245_v34, %v244_v33 }
 0x2df   : > { %v247_v36 = vrot.slane %v246_v35, 2 }
 0x2e1   : > { %v248_v37 = vadd.f32 %v247_v36, %v246_v35 }
 0x2e3   : > { %v249_v38 = vrot.slane %v248_v37, 1 }
 0x2e5   : > { %v250_v39 = vadd.f32 %v249_v38, %v248_v37 }
 0x2e7   : > { %352 = vpush %v250_v39 }
 0x318   : > { %s353_s24 = spop %352 }
 0x319   : > { %v252_v40 = vstv %s353_s24 }
 0x31a   : > { %253 = vst [vmem:[%s174_s17] sm:$0xff] %v252_v40 }
 0x31b   : > { %418 = shalt.err (!%p415_p3)
}
 0x31c   : > { %s419_s5 = scalar_lea.hbm %s266_s27, 128  ;;  %s423_s8 = scalar_lea.hbm %s599_s3, 384 }
 0x31d   : > { %p420_p4 = scmp.ne.s32.totalorder %s266_s27, %s419_s5  ;;  %p424_p9 = scmp.lt.s32.totalorder %s266_s27, %s599_s3 }
 0x31e   : > { %p425_p10 = scmp.lt.s32.totalorder %s423_s8, %s419_s5 }
 0x31f   : > { %p421_p7 = pnand %p420_p4, %p531_p5 }
 0x320   : > { %p426_p11 = por %p425_p10, %p424_p9 }
 0x321   : > { %p422_p8 = pneg %p421_p7 }
 0x323   : > { %p427_p12 = pnand %p426_p11, %p422_p8 }
 0x325   : > { %430 = shalt.err (!%p427_p12)
}
 0x326   : > { %354 = dma.vmem_to_hbm [thread:$0]  (%p531_p5), %s558_s19, 128, %s266_s27, %s255_s28  }
 0x327 PF: > { %p360_p13 = scmp.ge.s32.totalorder %s465_s15, 2  ;;  %s280_s11 = sand.u32 1, %s453_s12  }
 0x328   : > { %s281_s17 = scalar_lea.sflag [#allocation3], %s280_s11 }
 0x329   : > { %p357_p0 = pnand %p360_p13, %p535_p6 }
 0x32b   : > { %p358_p1 = pneg %p357_p0 }
 0x32d   : > { %448 = dma.done.wait (%p358_p1), %s281_s17, 128  }
 0x32e   : > { %450 = vsyncadd (%p358_p1), %s281_s17, 4294967168  ;;  %p13_p2 = scmp.ge.s32.totalorder %s518_s18, 5   ;;  %s602_s12 = smov %s457_s13 }
 0x32f   : > { %s603_s13 = smov %s461_s14  ;;  %s604_s14 = smov %s529_s21 }
 0x330   : > { %s605_s15 = smov %s518_s18  ;;  %15 = sbr.rel (!%p13_p2) target bundleno = 3 (0x3), region = 70 }
 0x335   :  { %286 = vsyncpa [#allocation3], 1 }
 0x336   :  { %288 = vsyncpa [#allocation3 + $0x1], 1 }

</bundles_post_ra>
